<compile_context>
chip_gen: v7x
topology: tpu7x:2x2x1
jax: 0.10.0
libtpu: 0.0.40
codegen_flags: <defaults>
</compile_context>

<pallas_src>
import math

import jax
import jax.numpy as jnp
from jax.experimental import pallas as pl
from jax.experimental.pallas import tpu as pltpu


# ----------------------------- Pallas kernel ------------------------------ #

def _fused_branch_kernel(c_ref, w_ref, const_ref, out_ref):
    """out = c @ W_fold + const for one (TN, L) row block of the flat batch."""
    acc = jnp.dot(c_ref[...], w_ref[...], preferred_element_type=jnp.float32)
    out_ref[...] = (acc + const_ref[...]).astype(out_ref.dtype)


def patch_embed_branch(c, w_fold, const, patch_num, d_model, *,
                       tn=512, compute_dtype=jnp.bfloat16,
                       vmem_budget_bytes=8 << 20):
    """c: (N, L) seasonal component -> (N, patch_num, d_model).

    Batched-N grid: each step processes a (TN, L) row block and writes a
    lane-dense (TN, patch_num*d_model) block.  TN defaults to 512 so production
    batch sizes give several "parallel" grid steps (v7x has 2 TensorCores),
    while the double-buffered in+out blocks stay far below every chip's scoped
    VMEM default (v5e 16 MiB / v6e 32 MiB / v7x 32 MiB).
    """
    N, L = c.shape
    M = patch_num * d_model

    # Row tile: multiple of 8 sublanes, capped by the VMEM budget
    # (double-buffered f32 output block dominates).
    bytes_per_row = 2 * (M * 4 + L * jnp.dtype(compute_dtype).itemsize)
    tn_cap = max(8, (vmem_budget_bytes // max(bytes_per_row, 1)) // 8 * 8)
    tn = max(8, min(tn, tn_cap, ((N + 7) // 8) * 8))
    n_pad = pl.cdiv(N, tn) * tn

    c_p = c.astype(compute_dtype)
    if n_pad != N:
        c_p = jnp.pad(c_p, ((0, n_pad - N), (0, 0)))

    out = pl.pallas_call(
        _fused_branch_kernel,
        out_shape=jax.ShapeDtypeStruct((n_pad, M), jnp.float32),
        grid=(n_pad // tn,),
        in_specs=[
            pl.BlockSpec((tn, L), lambda n: (n, 0)),   # activations: tiled over N
            pl.BlockSpec((L, M), lambda n: (0, 0)),    # folded weight: resident
            pl.BlockSpec((1, M), lambda n: (0, 0)),    # folded (Wch@pe + bias)
        ],
        out_specs=pl.BlockSpec((tn, M), lambda n: (n, 0)),
        compiler_params=pltpu.CompilerParams(
            dimension_semantics=("parallel",)),
    )(c_p, w_fold.astype(compute_dtype), const.astype(jnp.float32))

    return out[:N].reshape(N, patch_num, d_model)


# ------------------------- weight folding (wrapper) ------------------------ #

def _fold_branch_weights(w_tok, w_ch, b_ch, pe, seq_len, patch_len, stride,
                         patch_num, d_model):
    """Fold pad + unfold + token-conv (+pe) + channel-conv (+bias) into
    (W_fold, const), computed once per branch from KB-sized weights.

      w_tok : (d_model, patch_len, 3)   TokenEmbedding Conv1d weight (circular k=3)
      w_ch  : (patch_num, patch_num)    channel_embedding Conv1d(k=1) weight
      b_ch  : (patch_num,)              channel_embedding bias
      pe    : (>=patch_num, d_model)    sinusoidal positional embedding

    Returns W_fold (seq_len, patch_num*d_model) and const (1, patch_num*d_model)
    such that  out = c @ W_fold + const  reproduces the branch exactly
    (Dropout p=0.1 is identity in the eval-mode forward).
    """
    P, plen, L = patch_num, patch_len, seq_len
    # wch_shifts[k, r, q] = w_ch[q, (r - k + 1) % P]   (circular-conv index algebra)
    wch_t = w_ch.T
    wch_shifts = jnp.stack([jnp.roll(wch_t, k - 1, axis=0) for k in range(3)])
    # a4[r, j, q, d] = sum_k w_ch[q, (r-k+1)%P] * w_tok[d, j, k]
    a4 = jnp.einsum('krq,djk->rjqd', wch_shifts, w_tok)          # (P, plen, P, dm)
    # Each (patch r, offset j) maps to padded-sequence index r*stride + j, clamped
    # to L-1 (== ReplicationPad1d((0, stride))).  Scatter-add onto the raw index.
    l_idx = jnp.minimum(
        jnp.arange(P)[:, None] * stride + jnp.arange(plen)[None, :], L - 1
    ).reshape(-1)
    w_fold = jnp.zeros((L, P, d_model), jnp.float32).at[l_idx].add(
        a4.reshape(P * plen, P, d_model)).reshape(L, P * d_model)
    const = (w_ch @ pe[:P] + b_ch[:, None]).reshape(1, P * d_model)
    return w_fold, const


# ------------------------------ JAX glue ---------------------------------- #

def _moving_avg(x, k):
    """Stride-1 moving average with replication padding (Autoformer-style)."""
    N, L = x.shape
    pad_f = (k - 1) // 2
    pad_e = k - 1 - pad_f
    xp = jnp.concatenate(
        [jnp.repeat(x[:, :1], pad_f, axis=1), x,
         jnp.repeat(x[:, -1:], pad_e, axis=1)], axis=1)
    idx = jnp.arange(L)[:, None] + jnp.arange(k)[None, :]
    return xp[:, idx].mean(axis=-1)


def _tmpq(x):
    # TODO(synk): TMPQ is not defined in the provided source; implemented here as
    # a deterministic multi-scale moving-average trend/seasonal decomposition
    # satisfying x == trend + seasonal_1 + seasonal_2 + seasonal_3.
    ma1 = _moving_avg(x, 5)
    ma2 = _moving_avg(x, 9)
    ma3 = _moving_avg(x, 13)
    return {"trend": ma3,
            "seasonal_1": x - ma1,
            "seasonal_2": ma1 - ma2,
            "seasonal_3": ma2 - ma3}


def _positional_embedding(d_model, max_len):
    position = jnp.arange(max_len, dtype=jnp.float32)[:, None]
    div_term = jnp.exp(jnp.arange(0, d_model, 2, dtype=jnp.float32)
                       * -(math.log(10000.0) / d_model))
    pe = jnp.zeros((max_len, d_model), dtype=jnp.float32)
    pe = pe.at[:, 0::2].set(jnp.sin(position * div_term))
    pe = pe.at[:, 1::2].set(jnp.cos(position * div_term))
    return pe


def init_params(key, d_model, patch_lens, patch_nums):
    params = {}
    keys = jax.random.split(key, 6)
    for i in range(3):
        plen, pnum = patch_lens[i], patch_nums[i]
        # TokenEmbedding_i: Conv1d(plen, d_model, k=3, circular, bias=False),
        # torch weight layout (d_model, plen, 3).
        params[f"w_tok_{i}"] = 0.02 * jax.random.normal(
            keys[2 * i], (d_model, plen, 3), jnp.float32)
        # channel_embedding_i: Conv1d(pnum, pnum, k=1, bias=True)
        params[f"w_ch_{i}"] = 0.2 * jax.random.normal(
            keys[2 * i + 1], (pnum, pnum), jnp.float32)
        params[f"b_ch_{i}"] = jnp.full((pnum,), 0.01 * (i + 1), jnp.float32)
    params["pe"] = _positional_embedding(d_model, max_len=max(patch_nums))
    return params


def tmp_patch_embedding_forward(x, params, patch_lens, strides, patch_nums, *,
                                tn=512, compute_dtype=jnp.bfloat16):
    """x: (batch, n_vars, seq_len) -> (ct, c1, c2, c3)."""
    B, C, L = x.shape
    xs = x.reshape(B * C, L)                     # matches torch reshape + squeeze
    dec = _tmpq(xs)
    ct = dec["trend"][:, :L]
    outs = []
    for i in range(3):
        c = dec[f"seasonal_{i + 1}"][:, :L]
        d_model = params[f"w_tok_{i}"].shape[0]
        w_fold, const = _fold_branch_weights(
            params[f"w_tok_{i}"], params[f"w_ch_{i}"], params[f"b_ch_{i}"],
            params["pe"], L, patch_lens[i], strides[i], patch_nums[i], d_model)
        outs.append(patch_embed_branch(c, w_fold, const, patch_nums[i], d_model,
                                       tn=tn, compute_dtype=compute_dtype))
    return (ct, outs[0], outs[1], outs[2])


# ----------------------- pure-JAX un-fused reference ----------------------- #

def _branch_reference(c, w_tok, w_ch, b_ch, pe, patch_len, stride, patch_num):
    """f32 reference replicating the original op chain (pad/unfold/convs)."""
    P, plen = patch_num, patch_len
    c_pad = jnp.concatenate([c, jnp.repeat(c[:, -1:], stride, axis=1)], axis=1)
    idx = jnp.arange(P)[:, None] * stride + jnp.arange(plen)[None, :]
    patches = c_pad[:, idx]                                      # (N, P, plen)
    # circular k=3 conv over the patch axis: ve[n,p,d] = sum_k,j W[d,j,k]*x[(p+k-1)%P,j]
    ve = sum(jnp.einsum('npj,dj->npd', jnp.roll(patches, 1 - k, axis=1),
                        w_tok[:, :, k]) for k in range(3))
    h = ve + pe[None, :P, :]                                     # dropout = identity
    return jnp.einsum('qp,npd->nqd', w_ch, h) + b_ch[None, :, None]


# --------------------------------- main ----------------------------------- #

if __name__ == "__main__":
    d_model = 32
    B, C, L = 2, 4, 16
    patch_lens = (8, 4, 2)
    strides = (4, 2, 1)
    # ReplicationPad1d((0, stride)) then unfold(size=plen, step=stride):
    patch_nums = tuple((L + s - p) // s + 1 for p, s in zip(patch_lens, strides))
    # -> (4, 8, 16)

    key = jax.random.PRNGKey(0)
    kx, kp = jax.random.split(key)
    x = jax.random.normal(kx, (B, C, L), dtype=jnp.float32)
    params = init_params(kp, d_model, patch_lens, patch_nums)

    ct, c1, c2, c3 = tmp_patch_embedding_forward(x, params, patch_lens, strides,
                                                 patch_nums)
    jax.block_until_ready((ct, c1, c2, c3))

    assert ct.shape == (B * C, L)
    assert c1.shape == (B * C, patch_nums[0], d_model)
    assert c2.shape == (B * C, patch_nums[1], d_model)
    assert c3.shape == (B * C, patch_nums[2], d_model)

    # Numerical self-check vs the un-fused pure-JAX reference (bf16 operands,
    # f32 accumulation -> small drift allowed).
    xs = x.reshape(B * C, L)
    dec = _tmpq(xs)
    for i, out in enumerate((c1, c2, c3)):
        c = dec[f"seasonal_{i + 1}"][:, :L]
        ref = _branch_reference(c, params[f"w_tok_{i}"], params[f"w_ch_{i}"],
                                params[f"b_ch_{i}"], params["pe"],
                                patch_lens[i], strides[i], patch_nums[i])
        err = float(jnp.max(jnp.abs(out - ref)))
        assert err < 5e-2, f"branch {i} max abs err {err}"

    print("KERNEL_OK")
</pallas_src>

<mosaic_0001>
module attributes {stable_mosaic.version = 11 : i64} {
  func.func @_fused_branch_kernel(%arg0: i32, %arg1: memref<8x16xbf16, #tpu.memory_space<vmem>>, %arg2: memref<16x128xbf16, #tpu.memory_space<vmem>>, %arg3: memref<1x128xf32, #tpu.memory_space<vmem>>, %arg4: memref<8x128xf32, #tpu.memory_space<vmem>>) attributes {dimension_semantics = [#tpu.dimension_semantics<parallel>], iteration_bounds = array<i64: 1>, scalar_prefetch = 0 : i64, scratch_operands = 0 : i64, tpu.core_type = #tpu.core_type<tc>, window_params = [{transform_indices = @transform_0, window_bounds = array<i64: 8, 16>}, {pipeline_mode = #tpu.pipeline_mode<synchronous>, transform_indices = @transform_1, window_bounds = array<i64: 16, 128>}, {pipeline_mode = #tpu.pipeline_mode<synchronous>, transform_indices = @transform_2, window_bounds = array<i64: 1, 128>}, {transform_indices = @transform_3, window_bounds = array<i64: 8, 128>}]} {
    %c0 = arith.constant 0 : index
    %c0_0 = arith.constant 0 : index
    %0 = vector.load %arg1[%c0, %c0_0] : memref<8x16xbf16, #tpu.memory_space<vmem>>, vector<8x16xbf16>
    %c0_1 = arith.constant 0 : index
    %c0_2 = arith.constant 0 : index
    %1 = vector.load %arg2[%c0_1, %c0_2] : memref<16x128xbf16, #tpu.memory_space<vmem>>, vector<16x128xbf16>
    %cst = arith.constant dense<0.000000e+00> : vector<8x128xf32>
    %2 = tpu.matmul %0, %1, %cst {dimension_numbers = #tpu.dot_dimension_numbers<[1], [0], [0], [1], [0, 0, 1, 1], [], []>} : vector<8x16xbf16>, vector<16x128xbf16>, vector<8x128xf32> -> vector<8x128xf32>
    %c0_3 = arith.constant 0 : index
    %c0_4 = arith.constant 0 : index
    %3 = vector.load %arg3[%c0_3, %c0_4] : memref<1x128xf32, #tpu.memory_space<vmem>>, vector<1x128xf32>
    %4 = vector.broadcast %3 : vector<1x128xf32> to vector<8x128xf32>
    %5 = arith.addf %2, %4 : vector<8x128xf32>
    %c0_5 = arith.constant 0 : index
    %c0_6 = arith.constant 0 : index
    %6 = vector.load %arg4[%c0_5, %c0_6] : memref<8x128xf32, #tpu.memory_space<vmem>>, vector<8x128xf32>
    tpu.vector_store %arg4[%c0_5, %c0_6], %5 {strides = array<i32>} : memref<8x128xf32, #tpu.memory_space<vmem>>, vector<8x128xf32>,
    return
  }
  func.func @transform_0(%arg0: i32) -> (i32, i32) {
    %c0_i32 = arith.constant 0 : i32
    %c0_i32_0 = arith.constant 0 : i32
    return %arg0, %c0_i32 : i32, i32
  }
  func.func @transform_1(%arg0: i32) -> (i32, i32) {
    %c0_i32 = arith.constant 0 : i32
    %c0_i32_0 = arith.constant 0 : i32
    %c0_i32_1 = arith.constant 0 : i32
    return %c0_i32, %c0_i32_0 : i32, i32
  }
  func.func @transform_2(%arg0: i32) -> (i32, i32) {
    %c0_i32 = arith.constant 0 : i32
    %c0_i32_0 = arith.constant 0 : i32
    %c0_i32_1 = arith.constant 0 : i32
    return %c0_i32, %c0_i32_0 : i32, i32
  }
  func.func @transform_3(%arg0: i32) -> (i32, i32) {
    %c0_i32 = arith.constant 0 : i32
    %c0_i32_0 = arith.constant 0 : i32
    return %arg0, %c0_i32 : i32, i32
  }
}

</mosaic_0001>

<bundles_post_ra>
// kernel: tpu_custom_call.1
= control target key start
LH: loop header
LB: loop body
LE: loop exit
PB: predicated region body
PF: predicated region fallthrough
CT: control target
= control target key end

     0   :  { %8 = vsyncpa [#allocation3], 0  ;;  %s283_s0 = inlined_call_operand.hbm [shape: bf16[8,16], index: 0, kind: input, shape index: {}]   ;;  %s284_s1 = inlined_call_operand.hbm [shape: bf16[16,128], index: 1, kind: input, shape index: {}]   ;;  %s285_s2 = inlined_call_operand.vmem [shape: f32[1,128], index: 2, kind: input, shape index: {}]   ;;  %s286_s3 = inlined_call_operand.hbm [shape: f32[8,128], index: 3, kind: output, shape index: {}]  }
   0x1   :  { %9 = vsyncpa [#allocation6], 0 }
   0x2   :  { %10 = vsyncpa [#allocation4], 0  ;;  %s210_s12 = smov [#allocation2]   ;;  %s211_s14 = smov [#allocation5]  }
   0x3   :  { %s17_s13 = sshll.u32 %s210_s12, 4  ;;  %s26_s15 = sshll.u32 %s211_s14, 4  ;;  %s18_s13 = int_to_ptr.vmem [resolvable:$true] %s17_s13  ;;  %s237_s15 = int_to_ptr.vmem [resolvable:$true] %s26_s15 }
   0x4   :  { %s138_s18 = scalar_lea.hbm %s283_s0, 64 }
   0x5   :  { %p139_p0 = scmp.ne.s32.totalorder %s283_s0, %s138_s18  ;;  %p142_p1 = scmp.lt.u32.totalorder %s138_s18, %s283_s0 }
   0x7   :  { %p144_p2 = pnand %p142_p1, %p139_p0 }
   0x9   :  { %147 = shalt.err (!%p144_p2)
}
   0xa   :  { %s148_s23 = scalar_lea.vmem %s18_s13, 64  ;;  %p153_p4 = scmp.lt.s32.totalorder %s18_s13, %s18_s13 }
   0xb   :  { %p149_p3 = scmp.ne.s32.totalorder %s18_s13, %s148_s23  ;;  %p154_p5 = scmp.lt.s32.totalorder %s148_s23, %s148_s23 }
   0xd   :  { %p155_p6 = por %p154_p5, %p153_p4 }
   0xf   :  { %p156_p7 = pnand %p155_p6, %p149_p3 }
  0x11   :  { %159 = shalt.err (!%p156_p7)
}
  0x12   :  { %20 = dma.hbm_to_vmem [thread:$0]  %s283_s0, 64, %s18_s13, [#allocation3]  }
  0x13   :  { %s160_s28 = scalar_lea.hbm %s284_s1, 128 }
  0x14   :  { %p161_p8 = scmp.ne.s32.totalorder %s284_s1, %s160_s28  ;;  %p164_p9 = scmp.lt.u32.totalorder %s160_s28, %s284_s1 }
  0x16   :  { %p166_p10 = pnand %p164_p9, %p161_p8 }
  0x18   :  { %169 = shalt.err (!%p166_p10)
}
  0x19   :  { %s170_s6 = scalar_lea.vmem %s237_s15, 128  ;;  %p175_p12 = scmp.lt.s32.totalorder %s237_s15, %s237_s15 }
  0x1a   :  { %p171_p11 = scmp.ne.s32.totalorder %s237_s15, %s170_s6  ;;  %p176_p13 = scmp.lt.s32.totalorder %s170_s6, %s170_s6 }
  0x1c   :  { %p177_p0 = por %p176_p13, %p175_p12 }
  0x1e   :  { %p178_p1 = pnand %p177_p0, %p171_p11 }
  0x20   :  { %181 = shalt.err (!%p178_p1)
}
  0x21   :  { %s212_s0 = smov 64   ;;  %s213_s7 = smov 4  }
  0x22   :  { %32 = dma.hbm_to_vmem [thread:$0]  %s284_s1, 128, %s237_s15, [#allocation6], %s212_s0, %s212_s0, %s213_s7  }
  0x23   :  { %204 = dma.done.wait [#allocation3], 64  }
  0x24   :  { %205 = vsyncadd [#allocation3], 4294967232 }
  0x25   :  { %206 = dma.done.wait [#allocation6], 128  }
  0x26   :  { %207 = vsyncadd [#allocation6], 4294967168  ;;  %v214_v0 = vmov 0.0   ;;  %vm215_vm0 = vmmov 0   ;;  %v137_v1 = vld [vmem:[#allocation5] sm:$0xff]   ;;  %vm58_vm1 = vcmask 130048  }
  0x27   :  { %124 = vmatprep.subr.bf16.mxu0 %v214_v0  ;;  %126 = vmatprep.mubr.msk.bf16.mxu0 %vm215_vm0, %v214_v0  ;;  %v42_v2 = vld [vmem:[#allocation2] sm:$0xf]  ;;  %s216_s12 = smov [#allocation7]  }
  0x28   :  { %125 = vmatpush3.bf16.msra.mxu0 %v137_v1  ;;  %v119_v3 = vld [vmem:[%s285_s2] ss:$0 sm:$0xff]  ;;  %s109_s13 = sshll.u32 %s216_s12, 4  ;;  %s110_s13 = int_to_ptr.vmem [resolvable:$true] %s109_s13 }
  0x29   :  { %s182_s1 = scalar_lea.vmem %s110_s13, 128  ;;  %p187_p3 = scmp.lt.s32.totalorder %s110_s13, %s110_s13 }
  0x2a   :  { %p183_p2 = scmp.ne.s32.totalorder %s110_s13, %s182_s1  ;;  %p188_p4 = scmp.lt.s32.totalorder %s182_s1, %s182_s1 }
  0x2b   :  { %127 = vmatmul.mubr.msk.bf16.vlgmr.msra.gmra.mrb[0].mxu0 %vm58_vm1, %v42_v2 }
  0x2c   :  { %p189_p5 = por %p188_p4, %p187_p3 }
  0x2e   :  { %p190_p6 = pnand %p189_p5, %p183_p2 }
  0xfe   :  { %v96_v4 = vpop.f32.mrb[0].mxu0 }
  0xff   :  { %v97_v5 = vadd.f32 %v119_v3, %v96_v4  ;;  %v128_v6 = vpop.f32.mrb[1].mxu0 }
 0x100   :  { %v99_v7 = vpop.f32.mrb[2].mxu0 }
 0x101   :  { %102 = vst [vmem:[#allocation7] sm:$0xff] %v97_v5  ;;  %v129_v8 = vpop.f32.mrb[3].mxu0 }
 0x102   :  { %193 = shalt.err (!%p190_p6)
}
 0x103   :  { %s194_s2 = scalar_lea.hbm %s286_s3, 128 }
 0x104   :  { %p195_p7 = scmp.ne.s32.totalorder %s286_s3, %s194_s2  ;;  %p198_p8 = scmp.lt.u32.totalorder %s194_s2, %s286_s3 }
 0x106   :  { %p200_p9 = pnand %p198_p8, %p195_p7 }
 0x108   :  { %203 = shalt.err (!%p200_p9)
}
 0x109   :  { %112 = dma.vmem_to_hbm [thread:$0]  %s110_s13, 128, %s286_s3, [#allocation4]  }
 0x10a   :  { %208 = dma.done.wait [#allocation4], 128  }
 0x10b   :  { %209 = vsyncadd [#allocation4], 4294967168 }
 0x10c   :  { %116 = vsyncpa [#allocation3], 1 }
 0x10d   :  { %117 = vsyncpa [#allocation6], 1 }
 0x10e   :  { %118 = vsyncpa [#allocation4], 1 }

</bundles_post_ra>
